<compile_context>
chip_gen: v5e
topology: v5e:2x2
jax: 0.10.0
libtpu: 0.0.40
codegen_flags: <defaults>
</compile_context>

<pallas_src>
import functools
import math

import numpy as np

import jax
import jax.numpy as jnp
from jax.experimental import pallas as pl
from jax.experimental.pallas import tpu as pltpu


# ----------------------------------------------------------------------------
# Kernel 1: fused embedding gather (scalar-prefetch row indices)
#           + sqrt(d_model) scale (pre-folded into the table) + positional add
# ----------------------------------------------------------------------------
def _embed_gather_kernel(ids_ref, emb_ref, pos_ref, out_ref):
    del ids_ref  # only used by the index_maps
    out_ref[...] = emb_ref[...] + pos_ref[...]


def embed_gather_pos(token_ids, emb_table, pos_enc, *, dtype):
    """token_ids: [B, S] int; emb_table: [V, D] f32; pos_enc: [1, P, D] f32."""
    B, S = token_ids.shape
    V, D = emb_table.shape
    # Fold the sqrt(d_model) scale into the table (one-time host prep).
    emb_scaled = (emb_table * math.sqrt(D)).astype(dtype).reshape(V, 1, D)
    pos = pos_enc[0, :S, :].astype(dtype).reshape(S, 1, D)
    ids = token_ids.reshape(-1).astype(jnp.int32)
    N = B * S

    out = pl.pallas_call(
        _embed_gather_kernel,
        out_shape=jax.ShapeDtypeStruct((N, 1, D), dtype),
        grid_spec=pltpu.PrefetchScalarGridSpec(
            num_scalar_prefetch=1,
            grid=(N,),
            in_specs=[
                # data-dependent row gather: block index comes from the
                # prefetched token ids (SMEM)
                pl.BlockSpec((1, 1, D), lambda i, ids: (ids[i], 0, 0)),
                pl.BlockSpec((1, 1, D), lambda i, ids: (i % S, 0, 0)),
            ],
            out_specs=pl.BlockSpec((1, 1, D), lambda i, ids: (i, 0, 0)),
        ),
        compiler_params=pltpu.CompilerParams(dimension_semantics=("arbitrary",)),
    )(ids, emb_scaled, pos)
    return out.reshape(B, S, D)


# ----------------------------------------------------------------------------
# Kernel 2: fused EncoderLayer (self-MHA + Add&Norm + FFN + Add&Norm)
# grid = (batch, head_group); head-group axis is an accumulation ("arbitrary")
# axis, batch axis is "parallel".
# ----------------------------------------------------------------------------
def _layer_norm(x, gamma, beta, eps):
    mu = jnp.mean(x, axis=-1, keepdims=True)
    var = jnp.mean(jnp.square(x - mu), axis=-1, keepdims=True)
    inv = jax.lax.rsqrt(var + eps)
    return (x - mu) * inv * gamma + beta


def _encoder_layer_kernel(x_ref, mask_ref,
                          wqkv_ref, bqkv_ref, wo_ref, bo_ref,
                          ln1_g_ref, ln1_b_ref,
                          w1_ref, b1_ref, w2_ref, b2_ref,
                          ln2_g_ref, ln2_b_ref,
                          out_ref,
                          acc_ref, mbias_ref,
                          *, heads_per_step, depth, eps):
    g = pl.program_id(1)
    x = x_ref[0]                       # (S, D), storage/compute dtype
    cdt = x.dtype
    hw = heads_per_step * depth

    # Per-batch init: zero the head-group accumulator; compute the key-padding
    # bias once per batch row ((1, S) instead of (S, S)) and reuse it for every
    # head in every group.
    @pl.when(g == 0)
    def _():
        acc_ref[...] = jnp.zeros_like(acc_ref)
        mbias_ref[...] = mask_ref[0].astype(jnp.float32) * (-1e9)

    # Fused Q/K/V projection for this head group: one MXU call, N = 3*hp*dh.
    # (1/sqrt(dh) is already folded into the Q columns/bias.)
    qkv = jnp.dot(x, wqkv_ref[0], preferred_element_type=jnp.float32) + bqkv_ref[0]

    ctx_parts = []
    for j in range(heads_per_step):                 # static, unrolled
        qh = qkv[:, j * depth:(j + 1) * depth]
        kh = qkv[:, hw + j * depth: hw + (j + 1) * depth]
        vh = qkv[:, 2 * hw + j * depth: 2 * hw + (j + 1) * depth]

        s = jnp.dot(qh, kh.T, preferred_element_type=jnp.float32)
        s = s + mbias_ref[...]                      # broadcast over the query dim

        # Softmax in f32; the divide goes to the EUP via approximate reciprocal.
        m = jnp.max(s, axis=-1, keepdims=True)
        e = jnp.exp(s - m)
        p = e * pl.reciprocal(jnp.sum(e, axis=-1, keepdims=True), approx=True)

        ctx_parts.append(jnp.dot(p.astype(cdt), vh.astype(cdt),
                                 preferred_element_type=jnp.float32))

    ctx = ctx_parts[0] if heads_per_step == 1 else jnp.concatenate(ctx_parts, axis=-1)

    # Head merge inside the MXU: one Wo contraction with K = hp*dh, accumulated
    # across head groups in a VMEM f32 accumulator.
    acc_ref[...] += jnp.dot(ctx.astype(cdt), wo_ref[0],
                            preferred_element_type=jnp.float32)

    # Last head group: MHA output bias, residual, LN1, FFN, residual, LN2.
    @pl.when(g == pl.num_programs(1) - 1)
    def _():
        xf = x.astype(jnp.float32)
        attn_out = acc_ref[...] + bo_ref[...]
        y1 = _layer_norm(xf + attn_out, ln1_g_ref[...], ln1_b_ref[...], eps)

        ff = jnp.dot(y1.astype(cdt), w1_ref[...],
                     preferred_element_type=jnp.float32) + b1_ref[...]
        ff = jnp.maximum(ff, 0.0)                                    # ReLU
        ff = jnp.dot(ff.astype(cdt), w2_ref[...],
                     preferred_element_type=jnp.float32) + b2_ref[...]

        y2 = _layer_norm(y1 + ff, ln2_g_ref[...], ln2_b_ref[...], eps)
        out_ref[0] = y2.astype(out_ref.dtype)


def _pick_heads_per_step(num_heads, depth, target_width=256):
    """Smallest divisor of num_heads whose group width reaches the MXU width."""
    # TODO(synk): at production shapes also cap by VMEM (esp. v7x 64 MiB).
    for hp in range(1, num_heads + 1):
        if num_heads % hp == 0 and hp * depth >= target_width:
            return hp
    return num_heads


def encoder_layer(x, key_pad_mask, layer_params, *, num_heads, eps=1e-6):
    """x: [B, S, D] (storage dtype); key_pad_mask: [B, 1, S] f32, 1.0 = masked."""
    B, S, D = x.shape
    dtype = x.dtype
    f32 = jnp.float32
    assert D % num_heads == 0
    dh = D // num_heads
    hp = _pick_heads_per_step(num_heads, dh)
    ng = num_heads // hp
    hw = hp * dh

    (wq, bq, wk, bk, wv, bv, wo, bo,
     ln1_g, ln1_b, w1, b1, w2, b2, ln2_g, ln2_b) = layer_params
    dff = w1.shape[0]

    # ---- one-time host-side layout plumbing (never per grid step) ----
    scale = dh ** -0.5                                 # folded into Wq / bq

    def head_group_cols(wt):                           # (D, D) -> (ng, D, hw)
        return jnp.transpose(wt.reshape(D, ng, hw), (1, 0, 2))

    wqkv = jnp.concatenate(
        [head_group_cols((wq * scale).T.astype(dtype)),     # Q columns (pre-scaled)
         head_group_cols(wk.T.astype(dtype)),               # K columns
         head_group_cols(wv.T.astype(dtype))],              # V columns
        axis=-1)                                             # (ng, D, 3*hw)
    bqkv = jnp.concatenate(
        [(bq * scale).reshape(ng, 1, hw),
         bk.reshape(ng, 1, hw),
         bv.reshape(ng, 1, hw)], axis=-1).astype(f32)        # (ng, 1, 3*hw)
    wo_g = wo.T.reshape(ng, hw, D).astype(dtype)             # per-group rows of Wo^T
    bo_r = bo.reshape(1, D).astype(f32)
    w1_t, b1_r = w1.T.astype(dtype), b1.reshape(1, dff).astype(f32)   # (D, dff)
    w2_t, b2_r = w2.T.astype(dtype), b2.reshape(1, D).astype(f32)     # (dff, D)
    ln1_gr, ln1_br = ln1_g.reshape(1, D).astype(f32), ln1_b.reshape(1, D).astype(f32)
    ln2_gr, ln2_br = ln2_g.reshape(1, D).astype(f32), ln2_b.reshape(1, D).astype(f32)

    x_spec = pl.BlockSpec((1, S, D), lambda b, g: (b, 0, 0))
    mask_spec = pl.BlockSpec((1, 1, S), lambda b, g: (b, 0, 0))
    wqkv_spec = pl.BlockSpec((1, D, 3 * hw), lambda b, g: (g, 0, 0))
    bqkv_spec = pl.BlockSpec((1, 1, 3 * hw), lambda b, g: (g, 0, 0))
    wo_spec = pl.BlockSpec((1, hw, D), lambda b, g: (g, 0, 0))
    rowd_spec = pl.BlockSpec((1, D), lambda b, g: (0, 0))
    w1_spec = pl.BlockSpec((D, dff), lambda b, g: (0, 0))
    b1_spec = pl.BlockSpec((1, dff), lambda b, g: (0, 0))
    w2_spec = pl.BlockSpec((dff, D), lambda b, g: (0, 0))
    out_spec = pl.BlockSpec((1, S, D), lambda b, g: (b, 0, 0))

    kernel = functools.partial(_encoder_layer_kernel,
                               heads_per_step=hp, depth=dh, eps=eps)

    return pl.pallas_call(
        kernel,
        out_shape=jax.ShapeDtypeStruct((B, S, D), dtype),
        grid_spec=pltpu.PrefetchScalarGridSpec(
            num_scalar_prefetch=0,
            grid=(B, ng),
            in_specs=[x_spec, mask_spec,
                      wqkv_spec, bqkv_spec,     # fused Wqkv, bqkv
                      wo_spec, rowd_spec,       # Wo, bo
                      rowd_spec, rowd_spec,     # ln1 gamma/beta
                      w1_spec, b1_spec,         # FFN layer 1
                      w2_spec, rowd_spec,       # FFN layer 2
                      rowd_spec, rowd_spec],    # ln2 gamma/beta
            out_specs=out_spec,
            scratch_shapes=[pltpu.VMEM((S, D), jnp.float32),   # head-group accumulator
                            pltpu.VMEM((1, S), jnp.float32)],  # key-pad bias * -1e9
        ),
        compiler_params=pltpu.CompilerParams(
            dimension_semantics=("parallel", "arbitrary")),
    )(x, key_pad_mask,
      wqkv, bqkv, wo_g, bo_r,
      ln1_gr, ln1_br, w1_t, b1_r, w2_t, b2_r, ln2_gr, ln2_br)


# ----------------------------------------------------------------------------
# Full Encoder forward
# ----------------------------------------------------------------------------
def encoder_forward(token_ids, key_pad_mask, params, *, num_heads,
                    dtype=jnp.float32):
    """token_ids: [B, S] int; key_pad_mask: [B, S] (1.0 at masked key positions)."""
    emb_table, pos_enc, layer_params = params
    B, S = token_ids.shape
    x = embed_gather_pos(token_ids, emb_table, pos_enc, dtype=dtype)   # Pallas gather
    mask3 = key_pad_mask.astype(jnp.float32).reshape(B, 1, S)
    for lp in layer_params:
        x = encoder_layer(x, mask3, lp, num_heads=num_heads)
    return x


# ----------------------------------------------------------------------------
# Pure-JAX reference mirroring the PyTorch module
# ----------------------------------------------------------------------------
def _ref_layer_norm(x, g, b, eps=1e-6):
    mu = x.mean(-1, keepdims=True)
    var = ((x - mu) ** 2).mean(-1, keepdims=True)
    return (x - mu) / jnp.sqrt(var + eps) * g + b


def _ref_mha(x, key_pad, wq, bq, wk, bk, wv, bv, wo, bo, num_heads):
    B, S, D = x.shape
    dh = D // num_heads

    def split(t):
        return t.reshape(B, S, num_heads, dh).transpose(0, 2, 1, 3)

    q = split(x @ wq.T + bq)
    k = split(x @ wk.T + bk)
    v = split(x @ wv.T + bv)
    scores = jnp.einsum('bhqd,bhkd->bhqk', q, k) / jnp.sqrt(jnp.float32(dh))
    scores = scores + key_pad[:, None, None, :] * (-1e9)
    w = jax.nn.softmax(scores, axis=-1)
    out = jnp.einsum('bhqk,bhkd->bhqd', w, v)
    out = out.transpose(0, 2, 1, 3).reshape(B, S, D)
    return out @ wo.T + bo


def _ref_encoder_layer(x, key_pad, lp, num_heads):
    (wq, bq, wk, bk, wv, bv, wo, bo,
     ln1_g, ln1_b, w1, b1, w2, b2, ln2_g, ln2_b) = lp
    attn = _ref_mha(x, key_pad, wq, bq, wk, bk, wv, bv, wo, bo, num_heads)
    y1 = _ref_layer_norm(x + attn, ln1_g, ln1_b)
    ff = jnp.maximum(y1 @ w1.T + b1, 0.0) @ w2.T + b2
    return _ref_layer_norm(y1 + ff, ln2_g, ln2_b)


def _reference_encoder(token_ids, key_pad, params, *, num_heads):
    emb_table, pos_enc, layer_params = params
    B, S = token_ids.shape
    D = emb_table.shape[1]
    x = emb_table[token_ids] * jnp.sqrt(jnp.float32(D)) + pos_enc[:, :S, :]
    for lp in layer_params:
        x = _ref_encoder_layer(x, key_pad, lp, num_heads)
    return x


# ----------------------------------------------------------------------------
# Params / positional encoding (deterministic)
# ----------------------------------------------------------------------------
def _positional_encoding(position, d_model):
    pos = np.arange(position)[:, None]
    i = np.arange(d_model)[None, :]
    angle_rates = 1.0 / np.power(10000.0, (2 * (i // 2)) / np.float32(d_model))
    angle_rads = pos * angle_rates
    angle_rads[:, 0::2] = np.sin(angle_rads[:, 0::2])
    angle_rads[:, 1::2] = np.cos(angle_rads[:, 1::2])
    return jnp.asarray(angle_rads[None, ...], dtype=jnp.float32)


def _init_layer_params(key, d_model, dff):
    keys = jax.random.split(key, 12)
    bd = 1.0 / math.sqrt(d_model)
    bf = 1.0 / math.sqrt(dff)

    def u(k, shape, bound):
        return jax.random.uniform(k, shape, jnp.float32, -bound, bound)

    wq, bq = u(keys[0], (d_model, d_model), bd), u(keys[1], (d_model,), bd)
    wk, bk = u(keys[2], (d_model, d_model), bd), u(keys[3], (d_model,), bd)
    wv, bv = u(keys[4], (d_model, d_model), bd), u(keys[5], (d_model,), bd)
    wo, bo = u(keys[6], (d_model, d_model), bd), u(keys[7], (d_model,), bd)
    w1, b1 = u(keys[8], (dff, d_model), bd), u(keys[9], (dff,), bd)
    w2, b2 = u(keys[10], (d_model, dff), bf), u(keys[11], (d_model,), bf)
    ln1_g, ln1_b = jnp.ones((d_model,), jnp.float32), jnp.zeros((d_model,), jnp.float32)
    ln2_g, ln2_b = jnp.ones((d_model,), jnp.float32), jnp.zeros((d_model,), jnp.float32)
    return (wq, bq, wk, bk, wv, bv, wo, bo,
            ln1_g, ln1_b, w1, b1, w2, b2, ln2_g, ln2_b)


if __name__ == "__main__":
    B, S, D, H, DFF = 2, 8, 32, 4, 64
    NUM_LAYERS, VOCAB, MAX_POS = 2, 50, 16

    root = jax.random.PRNGKey(0)
    k_tok, k_emb, k_layers = jax.random.split(root, 3)

    tokens = jax.random.randint(k_tok, (B, S), 0, VOCAB)

    # Key-padding mask: 1.0 at disallowed (padded) key positions, shape (B, S).
    valid_lens = jnp.array([S, S - 2])
    key_pad = (jnp.arange(S)[None, :] >= valid_lens[:, None]).astype(jnp.float32)

    emb_table = jax.random.normal(k_emb, (VOCAB, D), jnp.float32)
    pos_enc = _positional_encoding(MAX_POS, D)
    layer_keys = jax.random.split(k_layers, NUM_LAYERS)
    layers = tuple(_init_layer_params(k, D, DFF) for k in layer_keys)
    params = (emb_table, pos_enc, layers)

    ref = _reference_encoder(tokens, key_pad, params, num_heads=H)

    # f32 storage run, checked against the pure-JAX reference.
    out = encoder_forward(tokens, key_pad, params, num_heads=H, dtype=jnp.float32)
    out = jax.block_until_ready(out)
    assert out.shape == (B, S, D)
    max_err = float(jnp.max(jnp.abs(out - ref)))
    # Tolerance loosened slightly vs. exact f32 because the softmax divide uses
    # the EUP approximate reciprocal.
    assert jnp.allclose(out, ref, atol=1e-2, rtol=1e-2), f"f32 mismatch: {max_err}"

    # bf16 storage run (weights + activations bf16; softmax/LN stay f32 in-kernel).
    out_bf16 = encoder_forward(tokens, key_pad, params, num_heads=H, dtype=jnp.bfloat16)
    out_bf16 = jax.block_until_ready(out_bf16).astype(jnp.float32)
    assert bool(jnp.all(jnp.isfinite(out_bf16)))
    assert float(jnp.max(jnp.abs(out_bf16 - ref))) < 0.5, "bf16 sanity check failed"

    print("KERNEL_OK")
</pallas_src>

<mosaic_0001>
module attributes {stable_mosaic.version = 11 : i64} {
  func.func @_embed_gather_kernel(%arg0: i32, %arg1: memref<16xi32, #tpu.memory_space<smem>>, %arg2: memref<1x1x32xf32, #tpu.memory_space<vmem>>, %arg3: memref<1x1x32xf32, #tpu.memory_space<vmem>>, %arg4: memref<1x1x32xf32, #tpu.memory_space<vmem>>) attributes {dimension_semantics = [#tpu.dimension_semantics<arbitrary>], iteration_bounds = array<i64: 16>, scalar_prefetch = 1 : i64, scratch_operands = 0 : i64, tpu.core_type = #tpu.core_type<tc>, window_params = [{transform_indices = @transform_0, window_bounds = array<i64: 1, 1, 32>}, {transform_indices = @transform_1, window_bounds = array<i64: 1, 1, 32>}, {transform_indices = @transform_2, window_bounds = array<i64: 1, 1, 32>}]} {
    %c0 = arith.constant 0 : index
    %c0_0 = arith.constant 0 : index
    %c0_1 = arith.constant 0 : index
    %0 = vector.load %arg2[%c0, %c0_0, %c0_1] : memref<1x1x32xf32, #tpu.memory_space<vmem>>, vector<1x1x32xf32>
    %c0_2 = arith.constant 0 : index
    %c0_3 = arith.constant 0 : index
    %c0_4 = arith.constant 0 : index
    %1 = vector.load %arg3[%c0_2, %c0_3, %c0_4] : memref<1x1x32xf32, #tpu.memory_space<vmem>>, vector<1x1x32xf32>
    %2 = arith.addf %0, %1 : vector<1x1x32xf32>
    %c0_5 = arith.constant 0 : index
    %c0_6 = arith.constant 0 : index
    %c0_7 = arith.constant 0 : index
    %3 = vector.load %arg4[%c0_5, %c0_6, %c0_7] : memref<1x1x32xf32, #tpu.memory_space<vmem>>, vector<1x1x32xf32>
    tpu.vector_store %arg4[%c0_5, %c0_6, %c0_7], %2 {strides = array<i32>} : memref<1x1x32xf32, #tpu.memory_space<vmem>>, vector<1x1x32xf32>,
    return
  }
  func.func @transform_0(%arg0: i32, %arg1: memref<16xi32, #tpu.memory_space<smem>>) -> (i32, i32, i32) {
    %0 = arith.index_cast %arg0 : i32 to index
    %1 = memref.load %arg1[%0] : memref<16xi32, #tpu.memory_space<smem>>
    %c0_i32 = arith.constant 0 : i32
    %c0_i32_0 = arith.constant 0 : i32
    %c0_i32_1 = arith.constant 0 : i32
    return %1, %c0_i32, %c0_i32_0 : i32, i32, i32
  }
  func.func @transform_1(%arg0: i32, %arg1: memref<16xi32, #tpu.memory_space<smem>>) -> (i32, i32, i32) {
    %c8_i32 = arith.constant 8 : i32
    %c0_i32 = arith.constant 0 : i32
    %0 = arith.cmpi eq, %c8_i32, %c0_i32 : i32
    %c1_i32 = arith.constant 1 : i32
    %1 = arith.select %0, %c1_i32, %c8_i32 : i32
    %2 = arith.remsi %arg0, %1 : i32
    %c0_i32_0 = arith.constant 0 : i32
    %3 = arith.cmpi ne, %2, %c0_i32_0 : i32
    %c0_i32_1 = arith.constant 0 : i32
    %4 = arith.cmpi slt, %2, %c0_i32_1 : i32
    %c0_i32_2 = arith.constant 0 : i32
    %5 = arith.cmpi slt, %1, %c0_i32_2 : i32
    %6 = arith.xori %4, %5 : i1
    %7 = arith.andi %6, %3 : i1
    %8 = arith.addi %2, %1 : i32
    %9 = arith.select %7, %8, %2 : i32
    %c0_i32_3 = arith.constant 0 : i32
    %c0_i32_4 = arith.constant 0 : i32
    %c0_i32_5 = arith.constant 0 : i32
    return %9, %c0_i32_3, %c0_i32_4 : i32, i32, i32
  }
  func.func @transform_2(%arg0: i32, %arg1: memref<16xi32, #tpu.memory_space<smem>>) -> (i32, i32, i32) {
    %c0_i32 = arith.constant 0 : i32
    %c0_i32_0 = arith.constant 0 : i32
    %c0_i32_1 = arith.constant 0 : i32
    return %arg0, %c0_i32, %c0_i32_0 : i32, i32, i32
  }
}

</mosaic_0001>

<bundles_post_ra>
// kernel: tpu_custom_call.1
= control target key start
LH: loop header
LB: loop body
LE: loop exit
PB: predicated region body
PF: predicated region fallthrough
CT: control target
= control target key end

     0   :  { %s461_s15 = smov [#allocation3]   ;;  %s575_s0 = inlined_call_operand.vmem [shape: s32[16], index: 0, kind: input, shape index: {}]   ;;  %s576_s1 = inlined_call_operand.vmem [shape: f32[50,1,32], index: 1, kind: input, shape index: {}]   ;;  %s577_s2 = inlined_call_operand.vmem [shape: f32[8,1,32], index: 2, kind: input, shape index: {}]   ;;  %s578_s3 = inlined_call_operand.hbm [shape: f32[16,1,32], index: 3, kind: output, shape index: {}]  }
   0x1   :  { %s9_s14 = sshll.u32 %s575_s0, 4  ;;  %s10_s14 = int_to_ptr.vmem [resolvable:$true] %s9_s14 }
   0x2   :  { %12 = dma.vmem_to_smem %s10_s14, 16, %s461_s15, [#allocation2] }
   0x3   :  { %439 = dma.done.wait [#allocation2], 16 }
   0x4   :  { %440 = vsyncadd [#allocation2], 4294967280 }
   0x5   :  { %15 = sfence }
   0x6   :  { %16 = vsyncpa [#allocation5], 0 }
   0x7   :  { %18 = vsyncpa [#allocation5 + $0x1], 0  ;;  %s485_s16 = smov 0   ;;  %s487_s17 = smov 0  }
   0x8   :  { %s489_s18 = smov 0   ;;  %s491_s19 = smov 0  }
   0x9 LB: > { %s506_s0 = sadd.s32 4294967295, %s459_s19   ;;  %s328_s20 = sadd.s32 4294967294, %s459_s19   ;;  %s459_s19 = sphi %s491_s19, %s584_s19   ;;  %s455_s18 = sphi %s489_s18, %s583_s18   ;;  %s451_s17 = sphi %s487_s17, %s582_s17   ;;  %s447_s16 = sphi %s485_s16, %s581_s16  }
   0xa   : > { %s510_s21 = sadd.s32 1, %s459_s19   ;;  %s109_s22 = sadd.s32 1, %s455_s18 }
   0xb   : > { %s106_s23 = ssub.s32 %s459_s19, %s510_s21  ;;  %p119_p0 = scmp.ne.s32.totalorder %s455_s18, %s451_s17 }
   0xc   : > { %p107_p1 = scmp.eq.s32.totalorder %s106_s23, 0  ;;  %p120_p2 = scmp.eq.s32.totalorder %s506_s0, 15 }
   0xd   : > { %p125_p3 = scmp.ne.s32.totalorder %s451_s17, %s447_s16  ;;  %p126_p4 = scmp.eq.s32.totalorder %s328_s20, 15 }
   0xe   : > { %s521_s24 = scalar_select %p107_p1, %s455_s18, %s109_s22  }
   0xf   : > { %p523_p5 = por %p120_p2, %p119_p0  ;;  %p527_p6 = por %p126_p4, %p125_p3 }
  0x10   : > { %p337_p7 = scmp.ge.s32.totalorder %s459_s19, 1  ;;  %p182_p8 = scmp.lt.s32.totalorder %s459_s19, 17 }
  0x12   : > { %p183_p9 = pnand %p337_p7, %p182_p8 }
  0x13   : > { %s217_s27 = sld [smem:[#allocation3 + %s506_s0]] (!%p183_p9)  ;;  %s223_s28 = ssub.s32 (!%p183_p9), 0, %s506_s0 }
  0x14   : > { %186 = sbr.rel (%p183_p9) target bundleno = 41 (0x29), region = 28  ;;  %p222_p10 = scmp.lt.s32.totalorder (!%p183_p9), %s506_s0, 0 }
  0x15   : > { %s338_s29 = smin.u32 (!%p183_p9), %s506_s0, %s223_s28  ;;  %s215_s5 = sand.u32 (!%p183_p9), 1, %s451_s17  }
  0x16   : > { %s225_s30 = sand.u32 (!%p183_p9), 7, %s338_s29   ;;  %s263_s9 = scalar_lea.hbm (!%p183_p9), %s578_s3, %s506_s0 }
  0x17   : > { %s226_s4 = ssub.s32 (!%p183_p9), 0, %s225_s30  ;;  %s216_s13 = scalar_lea.vmem (!%p183_p9), [#allocation4], %s215_s5 }
  0x18   : > { %s265_s14 = sshll.u32 (!%p183_p9), %s216_s13, 4  ;;  %s267_s15 = sshll.u32 (!%p183_p9), %s263_s9, 4  ;;  %s266_s14 = int_to_ptr.vmem [resolvable:$true] %s265_s14  ;;  %s268_s15 = int_to_ptr.hbm [resolvable:$true] %s267_s15 }
  0x19   : > { %p218_p11 = scmp.lt.s32.totalorder %s217_s27, 49  ;;  %s586_s4 = smov (!%p222_p10, %s226_s4), %s225_s30  ;;  %vm252_vm0 = vcmask 253952  }
  0x1a   : > { %p340_p12 = scmp.lt.s32.totalorder %s586_s4, 0  ;;  %s232_s6 = sadd.s32 8, %s586_s4 }
  0x1b   : > { %s588_s27 = smov (!%p218_p11, %s217_s27), 49  ;;  %s255_s0 = scalar_lea.sflag [#allocation5], %s215_s5 }
  0x1c   : > { %s590_s6 = smov (!%p340_p12, %s232_s6), %s586_s4  ;;  %s220_s12 = scalar_lea.vmem %s576_s1, %s588_s27 }
  0x1d   : > { %p234_p13 = scmp.lt.s32.totalorder %s590_s6, 7  ;;  %v249_v0 = vld [vmem:[%s220_s12] sm:$0x1]  ;;  %s409_s28 = sshra.s32 %s268_s15, 4  ;;  %s410_s28 = int_to_ptr.hbm [resolvable:$true] %s409_s28 }
  0x1e   : > { %s411_s27 = scalar_lea.hbm %s410_s28, 1  ;;  %s415_s4 = scalar_lea.hbm %s578_s3, 16 }
  0x1f   : > { %s592_s6 = smov (!%p234_p13, %s590_s6), 7  ;;  %p412_p0 = scmp.ne.s32.totalorder %s410_s28, %s411_s27 }
  0x20   : > { %s236_s23 = scalar_lea.vmem %s577_s2, %s592_s6  ;;  %p416_p3 = scmp.lt.s32.totalorder %s410_s28, %s578_s3 }
  0x21   : > { %v250_v1 = vld [vmem:[%s236_s23] sm:$0x1]  ;;  %p413_p1 = pnand %p412_p0, %p523_p5  ;;  %p417_p4 = scmp.lt.s32.totalorder %s415_s4, %s411_s27 }
  0x22   : > { %v251_v2 = vadd.f32 %v250_v1, %v249_v0 }
  0x23   : > { %p414_p2 = pneg %p413_p1  ;;  %p418_p7 = por %p417_p4, %p416_p3 }
  0x24   : > { %253 = vst.msk [vmem:[%s216_s13] sm:$0x1] %vm252_vm0, %v251_v2 }
  0x25   : > { %p419_p8 = pnand %p418_p7, %p414_p2 }
  0x27   : > { %422 = shalt.err (!%p419_p8)
}
  0x28   : > { %343 = dma.vmem_to_hbm [thread:$0]  (%p523_p5), %s266_s14, 16, %s268_s15, %s255_s0  }
  0x29 PF: > { %p349_p9 = scmp.ge.s32.totalorder %s459_s19, 2  ;;  %s279_s5 = sand.u32 1, %s447_s16  }
  0x2a   : > { %s280_s8 = scalar_lea.sflag [#allocation5], %s279_s5 }
  0x2b   : > { %p346_p10 = pnand %p349_p9, %p527_p6 }
  0x2d   : > { %p347_p11 = pneg %p346_p10 }
  0x2f   : > { %442 = dma.done.wait (%p347_p11), %s280_s8, 16  }
  0x30   : > { %444 = vsyncadd (%p347_p11), %s280_s8, 4294967280  ;;  %p21_p12 = scmp.ge.s32.totalorder %s510_s21, 18   ;;  %s581_s16 = smov %s451_s17 }
  0x31   : > { %s582_s17 = smov %s455_s18  ;;  %s583_s18 = smov %s521_s24 }
  0x32   : > { %s584_s19 = smov %s510_s21  ;;  %23 = sbr.rel (!%p21_p12) target bundleno = 9 (0x9), region = 66 }
  0x37   :  { %285 = vsyncpa [#allocation5], 1 }
  0x38   :  { %287 = vsyncpa [#allocation5 + $0x1], 1 }

</bundles_post_ra>
